<compile_context>
chip_gen: v6e
topology: v6e:2x2x1
jax: 0.10.0
libtpu: 0.0.40
codegen_flags: <defaults>
</compile_context>

<pallas_src>
import functools

import jax
import jax.numpy as jnp
from jax.experimental import pallas as pl
from jax.experimental.pallas import tpu as pltpu


def _channel_attention_kernel(x_ref, w1_ref, w2_ref, o_ref,
                              sum_acc, max_acc, *, hw_total, hw_tile):
    # x_ref block : (bN, C, tHW)  -- NCHW kept: C on sublanes, HW on lanes
    # w1_ref      : (Cr, C)       -- fc1 (1x1 conv, no bias)
    # w2_ref      : (C, Cr)       -- fc2 (1x1 conv, no bias)
    # o_ref block : (bN, C, 1)
    # sum_acc / max_acc scratch: (bN, C, 1) f32, persist across the spatial axis
    k = pl.program_id(1)
    num_k = pl.num_programs(1)

    @pl.when(k == 0)
    def _init():
        sum_acc[...] = jnp.zeros_like(sum_acc)
        max_acc[...] = jnp.full_like(max_acc, -jnp.inf)

    def _accumulate(x_sum, x_max):
        # Widen to f32 in-register; HBM/VMEM traffic stays in the native dtype.
        sum_acc[...] += jnp.sum(x_sum.astype(jnp.float32), axis=-1, keepdims=True)
        max_acc[...] = jnp.maximum(
            max_acc[...],
            jnp.max(x_max, axis=-1, keepdims=True).astype(jnp.float32))

    if hw_total % hw_tile != 0:
        # Ragged spatial tail: mask only on the LAST tile; all other tiles run
        # the unmasked fold (keeps the hot loop at cast+add+max per vreg).
        @pl.when(k < num_k - 1)
        def _hot():
            x = x_ref[...]
            _accumulate(x, x)

        @pl.when(k == num_k - 1)
        def _tail():
            x = x_ref[...]
            limit = hw_total - k * hw_tile                  # scalar remaining extent
            lane = jax.lax.broadcasted_iota(jnp.int32, x.shape, x.ndim - 1)
            valid = lane < limit
            _accumulate(jnp.where(valid, x, 0.0),           # 0 for the sum
                        jnp.where(valid, x, -jnp.inf))      # -inf for the max
    else:
        x = x_ref[...]
        _accumulate(x, x)

    @pl.when(k == num_k - 1)
    def _finalize():
        bn = sum_acc.shape[0]
        avg = sum_acc[...][:, :, 0] * (1.0 / hw_total)      # (bN, C)
        mx = max_acc[...][:, :, 0]                          # (bN, C)
        # Stack all pooled vectors of the batch block -> one MXU matmul pair.
        p = jnp.concatenate([avg, mx], axis=0)              # (2*bN, C)
        w1 = w1_ref[...].astype(jnp.float32)                # (Cr, C)
        w2 = w2_ref[...].astype(jnp.float32)                # (C, Cr)
        h = jnp.maximum(
            jax.lax.dot_general(p, w1, (((1,), (1,)), ((), ())),
                                preferred_element_type=jnp.float32), 0.0)   # (2bN, Cr)
        y = jax.lax.dot_general(h, w2, (((1,), (1,)), ((), ())),
                                preferred_element_type=jnp.float32)         # (2bN, C)
        out = y[:bn] + y[bn:]                               # avg branch + max branch
        o_ref[...] = jax.nn.sigmoid(out)[:, :, None].astype(o_ref.dtype)


def _largest_divisor_leq(n, cap):
    cap = max(1, min(n, int(cap)))
    for d in range(cap, 0, -1):
        if n % d == 0:
            return d
    return 1


def _vmem_capacity_bytes():
    try:
        info = pltpu.get_tpu_info()
        cap = getattr(info, "vmem_capacity_bytes", None)
        if cap:
            return int(cap)
    except Exception:
        pass
    return 64 << 20   # conservative fallback (v7x per-TC physical VMEM)


def channel_attention(x_nchw, w1, w2, *, hw_tile=None, bn=None):
    """CBAM ChannelAttention forward.

    x_nchw: (N, C, H, W)      PyTorch layout (no transpose performed).
    w1:     (C//ratio, C)     fc1 1x1-conv weight, squeezed.
    w2:     (C, C//ratio)     fc2 1x1-conv weight, squeezed.
    Returns (N, C, 1, 1), matching the torch module.
    """
    N, C, H, W = x_nchw.shape
    HW = H * W
    Cr = w1.shape[0]
    assert w1.shape == (Cr, C) and w2.shape == (C, Cr)

    # Free reshape (merges contiguous trailing dims): no HBM traffic.
    x = x_nchw.reshape(N, C, HW)
    itemsize = jnp.dtype(x.dtype).itemsize

    # Chip-aware budgets: v5e/v6e have 128 MiB physical VMEM, v7x has 64 MiB.
    phys_vmem = _vmem_capacity_bytes()
    buf_budget = min(max(phys_vmem // 8, 2 << 20), 16 << 20)   # per pipeline buffer

    # --- spatial tile (lane-aligned, tail-balanced) -------------------------
    if hw_tile is None:
        lane_bytes = max(1, C * itemsize)
        t = max(128, (buf_budget // lane_bytes) // 128 * 128)
        if HW <= t:
            hw_tile = HW
        else:
            nk = pl.cdiv(HW, t)
            hw_tile = min(t, ((pl.cdiv(HW, nk) + 127) // 128) * 128)
    elif hw_tile >= HW:
        hw_tile = HW
    assert hw_tile == HW or hw_tile % 128 == 0, "hw_tile must be lane-aligned"
    num_k = pl.cdiv(HW, hw_tile)

    # --- batch fold ----------------------------------------------------------
    if bn is None:
        block_row_bytes = max(1, C * hw_tile * itemsize)
        bn_mem = max(1, buf_budget // block_row_bytes)
        # Keep >=2 steps on the parallel axis when possible (v7x has 2 TCs).
        bn_cap = max(1, N // 2) if N >= 2 else 1
        bn = _largest_divisor_leq(N, min(bn_mem, bn_cap))
    assert N % bn == 0, "bn must divide N"

    kernel = functools.partial(
        _channel_attention_kernel, hw_total=HW, hw_tile=hw_tile)

    # Double-buffered x blocks + headroom for weights / scratch / output,
    # capped well below this chip's physical VMEM.
    x_block_bytes = bn * C * hw_tile * itemsize
    need = 2 * x_block_bytes + (4 << 20)
    vmem_cap = max(32 << 20, int(phys_vmem * 3 // 4))
    vmem_limit = int(min(max(need, 16 << 20), vmem_cap))

    out = pl.pallas_call(
        kernel,
        out_shape=jax.ShapeDtypeStruct((N, C, 1), x_nchw.dtype),
        grid_spec=pltpu.PrefetchScalarGridSpec(
            num_scalar_prefetch=0,
            grid=(N // bn, num_k),
            in_specs=[
                pl.BlockSpec((bn, C, hw_tile), lambda n, k: (n, 0, k)),
                pl.BlockSpec((Cr, C), lambda n, k: (0, 0)),
                pl.BlockSpec((C, Cr), lambda n, k: (0, 0)),
            ],
            out_specs=pl.BlockSpec((bn, C, 1), lambda n, k: (n, 0, 0)),
            scratch_shapes=[
                pltpu.VMEM((bn, C, 1), jnp.float32),   # running sum
                pltpu.VMEM((bn, C, 1), jnp.float32),   # running max
            ],
        ),
        compiler_params=pltpu.CompilerParams(
            dimension_semantics=("parallel", "arbitrary"),
            vmem_limit_bytes=vmem_limit,
        ),
    )(x, w1, w2)

    return out.reshape(N, C, 1, 1)


def _reference(x_nchw, w1, w2):
    # Pure-JAX reference mirroring the torch forward.
    avg = jnp.mean(x_nchw, axis=(2, 3))              # (N, C)
    mx = jnp.max(x_nchw, axis=(2, 3))                # (N, C)

    def mlp(p):
        return jnp.maximum(p @ w1.T, 0.0) @ w2.T

    return jax.nn.sigmoid(mlp(avg) + mlp(mx))[:, :, None, None]


if __name__ == "__main__":
    key = jax.random.PRNGKey(0)
    k_x, k_w1, k_w2, k_x2, k_x3 = jax.random.split(key, 5)

    # in_planes=64, ratio=16 -> hidden=4 (Conv2d(64,4,1) / Conv2d(4,64,1), no bias)
    N, C, H, W = 2, 64, 16, 16
    ratio = 16
    Cr = C // ratio

    x = jax.random.normal(k_x, (N, C, H, W), dtype=jnp.float32)
    w1 = jax.random.normal(k_w1, (Cr, C), dtype=jnp.float32) * 0.1   # fc1
    w2 = jax.random.normal(k_w2, (C, Cr), dtype=jnp.float32) * 0.1   # fc2

    # Case 1: whole-HW block (single spatial step per batch block).
    y = jax.block_until_ready(channel_attention(x, w1, w2))
    y_ref = _reference(x, w1, w2)
    assert y.shape == (N, C, 1, 1)
    assert jnp.allclose(y, y_ref, atol=1e-5, rtol=1e-5), "case 1 mismatch"

    # Case 2: forced spatial tiling with a ragged tail (exercises the gated
    # last-tile masking and init/finalize across the 'arbitrary' axis).
    x2 = jax.random.normal(k_x2, (N, C, 18, 18), dtype=jnp.float32)  # HW = 324
    y2 = jax.block_until_ready(channel_attention(x2, w1, w2, hw_tile=128))
    y2_ref = _reference(x2, w1, w2)
    assert jnp.allclose(y2, y2_ref, atol=1e-5, rtol=1e-5), "case 2 mismatch"

    # Case 3: batch folding (bN > 1) with small HW; exercises the stacked
    # (2*bN, C) finalize MLP and the (bN, C, hw) block path.
    x3 = jax.random.normal(k_x3, (8, C, 4, 4), dtype=jnp.float32)    # HW = 16
    y3 = jax.block_until_ready(channel_attention(x3, w1, w2))
    y3_ref = _reference(x3, w1, w2)
    assert jnp.allclose(y3, y3_ref, atol=1e-5, rtol=1e-5), "case 3 mismatch"

    print("KERNEL_OK")
</pallas_src>

<mosaic_0001>
module attributes {stable_mosaic.version = 11 : i64} {
  func.func @_channel_attention_kernel(%arg0: i32, %arg1: i32, %arg2: memref<1x64x256xf32, #tpu.memory_space<vmem>>, %arg3: memref<4x64xf32, #tpu.memory_space<vmem>>, %arg4: memref<64x4xf32, #tpu.memory_space<vmem>>, %arg5: memref<1x64x1xf32, #tpu.memory_space<vmem>>, %arg6: memref<1x64x1xf32, #tpu.memory_space<vmem>>, %arg7: memref<1x64x1xf32, #tpu.memory_space<vmem>>) attributes {dimension_semantics = [#tpu.dimension_semantics<parallel>, #tpu.dimension_semantics<arbitrary>], iteration_bounds = array<i64: 2, 1>, scalar_prefetch = 0 : i64, scratch_operands = 2 : i64, tpu.core_type = #tpu.core_type<tc>, window_params = [{transform_indices = @transform_0, window_bounds = array<i64: 1, 64, 256>}, {pipeline_mode = #tpu.pipeline_mode<synchronous>, transform_indices = @transform_1, window_bounds = array<i64: 4, 64>}, {pipeline_mode = #tpu.pipeline_mode<synchronous>, transform_indices = @transform_2, window_bounds = array<i64: 64, 4>}, {transform_indices = @transform_3, window_bounds = array<i64: 1, 64, 1>}]} {
    %c0_i32 = arith.constant 0 : i32
    %0 = arith.cmpi eq, %arg1, %c0_i32 : i32
    %1 = arith.extui %0 : i1 to i32
    %c0_i32_0 = arith.constant 0 : i32
    %2 = arith.cmpi ne, %1, %c0_i32_0 : i32
    scf.if %2 {
      %cst_18 = arith.constant 0.000000e+00 : f32
      %17 = vector.broadcast %cst_18 : f32 to vector<1x64x1xf32>
      %c0_19 = arith.constant 0 : index
      %c0_20 = arith.constant 0 : index
      %c0_21 = arith.constant 0 : index
      %18 = vector.load %arg6[%c0_19, %c0_20, %c0_21] : memref<1x64x1xf32, #tpu.memory_space<vmem>>, vector<1x64x1xf32>
      tpu.vector_store %arg6[%c0_19, %c0_20, %c0_21], %17 {strides = array<i32>} : memref<1x64x1xf32, #tpu.memory_space<vmem>>, vector<1x64x1xf32>,
      %cst_22 = arith.constant 0xFF800000 : f32
      %19 = vector.broadcast %cst_22 : f32 to vector<1x64x1xf32>
      %c0_23 = arith.constant 0 : index
      %c0_24 = arith.constant 0 : index
      %c0_25 = arith.constant 0 : index
      %20 = vector.load %arg7[%c0_23, %c0_24, %c0_25] : memref<1x64x1xf32, #tpu.memory_space<vmem>>, vector<1x64x1xf32>
      tpu.vector_store %arg7[%c0_23, %c0_24, %c0_25], %19 {strides = array<i32>} : memref<1x64x1xf32, #tpu.memory_space<vmem>>, vector<1x64x1xf32>,
    } else {
    }
    %c0 = arith.constant 0 : index
    %c0_1 = arith.constant 0 : index
    %c0_2 = arith.constant 0 : index
    %3 = vector.load %arg2[%c0, %c0_1, %c0_2] : memref<1x64x256xf32, #tpu.memory_space<vmem>>, vector<1x64x256xf32>
    %c0_3 = arith.constant 0 : index
    %c0_4 = arith.constant 0 : index
    %c0_5 = arith.constant 0 : index
    %4 = vector.load %arg6[%c0_3, %c0_4, %c0_5] : memref<1x64x1xf32, #tpu.memory_space<vmem>>, vector<1x64x1xf32>
    %cst = arith.constant dense<0.000000e+00> : vector<1x64xf32>
    %5 = vector.multi_reduction <add>, %3, %cst [2] : vector<1x64x256xf32> to vector<1x64xf32>
    %6 = vector.shape_cast %5 : vector<1x64xf32> to vector<1x64x1xf32>
    %7 = arith.addf %4, %6 : vector<1x64x1xf32>
    %c0_6 = arith.constant 0 : index
    %c0_7 = arith.constant 0 : index
    %c0_8 = arith.constant 0 : index
    %8 = vector.load %arg6[%c0_6, %c0_7, %c0_8] : memref<1x64x1xf32, #tpu.memory_space<vmem>>, vector<1x64x1xf32>
    tpu.vector_store %arg6[%c0_6, %c0_7, %c0_8], %7 {strides = array<i32>} : memref<1x64x1xf32, #tpu.memory_space<vmem>>, vector<1x64x1xf32>,
    %c0_9 = arith.constant 0 : index
    %c0_10 = arith.constant 0 : index
    %c0_11 = arith.constant 0 : index
    %9 = vector.load %arg7[%c0_9, %c0_10, %c0_11] : memref<1x64x1xf32, #tpu.memory_space<vmem>>, vector<1x64x1xf32>
    %cst_12 = arith.constant dense<0xFF800000> : vector<1x64xf32>
    %10 = vector.multi_reduction <maximumf>, %3, %cst_12 [2] : vector<1x64x256xf32> to vector<1x64xf32>
    %11 = vector.shape_cast %10 : vector<1x64xf32> to vector<1x64x1xf32>
    %12 = arith.maximumf %9, %11 : vector<1x64x1xf32>
    %c0_13 = arith.constant 0 : index
    %c0_14 = arith.constant 0 : index
    %c0_15 = arith.constant 0 : index
    %13 = vector.load %arg7[%c0_13, %c0_14, %c0_15] : memref<1x64x1xf32, #tpu.memory_space<vmem>>, vector<1x64x1xf32>
    tpu.vector_store %arg7[%c0_13, %c0_14, %c0_15], %12 {strides = array<i32>} : memref<1x64x1xf32, #tpu.memory_space<vmem>>, vector<1x64x1xf32>,
    %c0_i32_16 = arith.constant 0 : i32
    %14 = arith.cmpi eq, %arg1, %c0_i32_16 : i32
    %15 = arith.extui %14 : i1 to i32
    %c0_i32_17 = arith.constant 0 : i32
    %16 = arith.cmpi ne, %15, %c0_i32_17 : i32
    scf.if %16 {
      %c0_18 = arith.constant 0 : index
      %c0_19 = arith.constant 0 : index
      %c0_20 = arith.constant 0 : index
      %17 = vector.load %arg6[%c0_18, %c0_19, %c0_20] : memref<1x64x1xf32, #tpu.memory_space<vmem>>, vector<1x64x1xf32>
      %18 = vector.shape_cast %17 : vector<1x64x1xf32> to vector<1x64xf32>
      %cst_21 = arith.constant 3.906250e-03 : f32
      %19 = vector.broadcast %cst_21 : f32 to vector<1x64xf32>
      %20 = arith.mulf %18, %19 : vector<1x64xf32>
      %c0_22 = arith.constant 0 : index
      %c0_23 = arith.constant 0 : index
      %c0_24 = arith.constant 0 : index
      %21 = vector.load %arg7[%c0_22, %c0_23, %c0_24] : memref<1x64x1xf32, #tpu.memory_space<vmem>>, vector<1x64x1xf32>
      %22 = vector.shape_cast %21 : vector<1x64x1xf32> to vector<1x64xf32>
      %23 = tpu.concatenate %20, %22 in 0 : vector<1x64xf32>, vector<1x64xf32> -> vector<2x64xf32>
      %c0_25 = arith.constant 0 : index
      %c0_26 = arith.constant 0 : index
      %24 = vector.load %arg3[%c0_25, %c0_26] : memref<4x64xf32, #tpu.memory_space<vmem>>, vector<4x64xf32>
      %c0_27 = arith.constant 0 : index
      %c0_28 = arith.constant 0 : index
      %25 = vector.load %arg4[%c0_27, %c0_28] : memref<64x4xf32, #tpu.memory_space<vmem>>, vector<64x4xf32>
      %cst_29 = arith.constant dense<0.000000e+00> : vector<2x4xf32>
      %26 = tpu.matmul %23, %24, %cst_29 {dimension_numbers = #tpu.dot_dimension_numbers<[1], [1], [0], [0], [0, 0, 1, 0], [], []>} : vector<2x64xf32>, vector<4x64xf32>, vector<2x4xf32> -> vector<2x4xf32>
      %cst_30 = arith.constant 0.000000e+00 : f32
      %27 = vector.broadcast %cst_30 : f32 to vector<2x4xf32>
      %28 = arith.maximumf %26, %27 : vector<2x4xf32>
      %cst_31 = arith.constant dense<0.000000e+00> : vector<2x64xf32>
      %29 = tpu.matmul %28, %25, %cst_31 {dimension_numbers = #tpu.dot_dimension_numbers<[1], [1], [0], [0], [0, 0, 1, 0], [], []>} : vector<2x4xf32>, vector<64x4xf32>, vector<2x64xf32> -> vector<2x64xf32>
      %30 = vector.extract_strided_slice %29 {offsets = [0, 0], sizes = [1, 64], strides = [1, 1]} : vector<2x64xf32> to vector<1x64xf32>
      %31 = vector.extract_strided_slice %29 {offsets = [1, 0], sizes = [1, 64], strides = [1, 1]} : vector<2x64xf32> to vector<1x64xf32>
      %32 = arith.addf %30, %31 : vector<1x64xf32>
      %33 = arith.negf %32 : vector<1x64xf32>
      %34 = math.exp %33 : vector<1x64xf32>
      %cst_32 = arith.constant 1.000000e+00 : f32
      %35 = vector.broadcast %cst_32 : f32 to vector<1x64xf32>
      %36 = arith.addf %35, %34 : vector<1x64xf32>
      %37 = arith.divf %35, %36 : vector<1x64xf32>
      %38 = vector.shape_cast %37 : vector<1x64xf32> to vector<1x64x1xf32>
      %c0_33 = arith.constant 0 : index
      %c0_34 = arith.constant 0 : index
      %c0_35 = arith.constant 0 : index
      %39 = vector.load %arg5[%c0_33, %c0_34, %c0_35] : memref<1x64x1xf32, #tpu.memory_space<vmem>>, vector<1x64x1xf32>
      tpu.vector_store %arg5[%c0_33, %c0_34, %c0_35], %38 {strides = array<i32>} : memref<1x64x1xf32, #tpu.memory_space<vmem>>, vector<1x64x1xf32>,
    } else {
    }
    return
  }
  func.func @transform_0(%arg0: i32, %arg1: i32) -> (i32, i32, i32) {
    %c0_i32 = arith.constant 0 : i32
    %c0_i32_0 = arith.constant 0 : i32
    return %arg0, %c0_i32, %arg1 : i32, i32, i32
  }
  func.func @transform_1(%arg0: i32, %arg1: i32) -> (i32, i32) {
    %c0_i32 = arith.constant 0 : i32
    %c0_i32_0 = arith.constant 0 : i32
    %c0_i32_1 = arith.constant 0 : i32
    return %c0_i32, %c0_i32_0 : i32, i32
  }
  func.func @transform_2(%arg0: i32, %arg1: i32) -> (i32, i32) {
    %c0_i32 = arith.constant 0 : i32
    %c0_i32_0 = arith.constant 0 : i32
    %c0_i32_1 = arith.constant 0 : i32
    return %c0_i32, %c0_i32_0 : i32, i32
  }
  func.func @transform_3(%arg0: i32, %arg1: i32) -> (i32, i32, i32) {
    %c0_i32 = arith.constant 0 : i32
    %c0_i32_0 = arith.constant 0 : i32
    %c0_i32_1 = arith.constant 0 : i32
    return %arg0, %c0_i32, %c0_i32_0 : i32, i32, i32
  }
}

</mosaic_0001>

<bundles_post_ra>
// kernel: tpu_custom_call.1
= control target key start
LH: loop header
LB: loop body
LE: loop exit
PB: predicated region body
PF: predicated region fallthrough
CT: control target
= control target key end

     0   :  { %8 = vsyncpa [#allocation5], 0  ;;  %s1309_s0 = inlined_call_operand.hbm [shape: f32[2,64,256], index: 0, kind: input, shape index: {}]   ;;  %s1310_s1 = inlined_call_operand.vmem [shape: f32[4,64], index: 1, kind: input, shape index: {}]   ;;  %s1311_s2 = inlined_call_operand.vmem [shape: f32[64,4], index: 2, kind: input, shape index: {}]   ;;  %s1312_s3 = inlined_call_operand.vmem [shape: f32[2,64,1], index: 3, kind: output, shape index: {}]  }
   0x1   :  { %10 = vsyncpa [#allocation5 + $0x1], 0  ;;  %s1083_s12 = smov 0   ;;  %s1085_s13 = smov 0  }
   0x2   :  { %s1087_s14 = smov 0   ;;  %s1089_s15 = smov 0  }
   0x3   :  { %s1091_s16 = smov 0   ;;  %s1093_s17 = smov 0  }
   0x4 LB: > { %s847_s18 = sadd.s32 4294967295, %s1054_s17   ;;  %s28_s19 = sadd.s32 1, %s1050_s16  ;;  %s1054_s17 = sphi %s1093_s17, %s16_s17   ;;  %s1050_s16 = sphi %s1091_s16, %s1320_s16   ;;  %s1046_s15 = sphi %s1089_s15, %s1319_s15   ;;  %s1042_s14 = sphi %s1087_s14, %s1318_s14   ;;  %s1038_s13 = sphi %s1085_s13, %s1317_s13   ;;  %s1034_s12 = sphi %s1083_s12, %s1316_s12  }
   0x5   : > { %p30_p0 = scmp.ge.s32.totalorder %s28_s19, 2  ;;  %s37_s20 = sadd.s32 1, %s1042_s14 }
   0x6   : > { %p44_p1 = scmp.ne.s32.totalorder %s1042_s14, %s1038_s13  ;;  %p45_p2 = scmp.eq.s32.totalorder %s1054_s17, 0 }
   0x7   : > { %s1322_s19 = smov (%p30_p0, %s28_s19), 0  ;;  %p50_p4 = scmp.ne.s32.totalorder %s1038_s13, %s1034_s12 }
   0x8   : > { %p1119_p3 = por %p45_p2, %p44_p1  ;;  %s32_s22 = ssub.s32 %s1050_s16, %s1322_s19 }
   0x9   : > { %p51_p5 = scmp.eq.s32.totalorder %s847_s18, 0  ;;  %p35_p6 = scmp.eq.s32.totalorder %s32_s22, 0 }
   0xa   : > { %p915_p8 = scmp.lt.s32.totalorder %s1054_s17, 2  ;;  %s148_s25 = sand.u32 1, %s1042_s14  }
   0xb   : > { %p1126_p7 = por %p51_p5, %p50_p4  ;;  %s872_s26 = sshll.u32 %s1050_s16, 11 }
   0xc   : > { %s1132_s24 = scalar_select %p35_p6, %s1042_s14, %s37_s20  }
   0xd   : > { %s851_s27 = sshll.u32 %s148_s25, 7  ;;  %s160_s30 = scalar_lea.hbm %s1309_s0, %s872_s26 }
   0xe   : > { %s152_s4 = scalar_lea.vmem [#allocation4], %s851_s27  ;;  %p1141_p9 = pnand %p915_p8, %p1119_p3 }
   0xf   : > { %s161_s5 = sshll.u32 %s152_s4, 4  ;;  %s149_s7 = scalar_lea.sflag [#allocation5], %s148_s25  ;;  %s162_s5 = int_to_ptr.vmem [resolvable:$true] %s161_s5 }
  0x10   : > { %p978_p10 = pneg %p1141_p9  ;;  %s989_s8 = scalar_lea.vmem %s162_s5, 2048 }
  0x11   : > { %p990_p11 = scmp.ne.s32.totalorder %s162_s5, %s989_s8  ;;  %s1056_s9 = smov [#allocation4]  }
  0x12   : > { %s994_s10 = sshll.u32 %s1056_s9, 4  ;;  %s995_s10 = int_to_ptr.vmem [resolvable:$false] %s994_s10 }
  0x13   : > { %p992_p12 = pnand %p990_p11, %p978_p10  ;;  %s996_s11 = scalar_lea.vmem %s995_s10, 4096 }
  0x14   : > { %p997_p0 = scmp.lt.s32.totalorder %s162_s5, %s995_s10  ;;  %p998_p1 = scmp.lt.s32.totalorder %s996_s11, %s989_s8 }
  0x15   : > { %p993_p13 = pneg %p992_p12 }
  0x16   : > { %p999_p2 = por %p998_p1, %p997_p0 }
  0x18   : > { %p1000_p3 = pnand %p999_p2, %p993_p13 }
  0x1a   : > { %1003 = shalt.err (!%p1000_p3)
}
  0x1b   : > { %s1057_s12 = smov 256   ;;  %s1058_s18 = smov 16  }
  0x1c   : > { %914 = dma.hbm_to_vmem [thread:$0]  (!%p1141_p9), %s160_s30, 2048, %s162_s5, %s149_s7, %s1057_s12, %s1057_s12, %s1058_s18  }
  0x1d   : > { %p854_p4 = scmp.ge.s32.totalorder %s1054_s17, 1  ;;  %p169_p5 = scmp.lt.s32.totalorder %s1054_s17, 3 }
  0x1f   : > { %p170_p6 = pnand %p854_p4, %p169_p5 }
  0x20   : > { %s175_s20 = sand.u32 (!%p170_p6), 1, %s1038_s13  }
  0x21   : > { %173 = sbr.rel (%p170_p6) target bundleno = 921 (0x399), region = 32  ;;  %s855_s21 = sshll.u32 (!%p170_p6), %s175_s20, 7 }
  0x22   : > { %s176_s22 = scalar_lea.sflag (!%p170_p6), [#allocation5], %s175_s20  ;;  %s1152_s25 = scalar_lea.vmem (!%p170_p6), [#allocation4], %s855_s21 }
  0x26   : > { %1029 = dma.done.wait (%p1126_p7), %s176_s22, 2048  }
  0x27   : > { %1031 = vsyncadd (%p1126_p7), %s176_s22, 4294965248  ;;  %vm212_vm0 = vcmask 7168   ;;  %v1059_v0 = vmov 0.0   ;;  %v233_v1 = vld [vmem:[%s1152_s25 + $0x20] sm:$0xff]  ;;  %v234_v2 = vld [vmem:[%s1152_s25 + $0x28] sm:$0xff]  ;;  %v1060_v21 = vmov -inf  }
  0x28   : > { %215 = vst.msk [vmem:[#allocation2 + $0x10] sm:$0xff] %vm212_vm0, %v1059_v0  ;;  %213 = vst.msk [vmem:[#allocation2] sm:$0xff] %vm212_vm0, %v1059_v0  ;;  %885 = vmatprep.subr.mxu0 %v1059_v0  ;;  %890 = vmatprep.subr.mxu1 %v1059_v0  ;;  %v229_v3 = vld [vmem:[%s1152_s25] sm:$0xff]  ;;  %v259_v4 = vadd.f32 %v234_v2, %v233_v1  ;;  %v230_v5 = vld [vmem:[%s1152_s25 + $0x8] sm:$0xff]  ;;  %v308_v17 = vmax.f32 %v233_v1, %v234_v2  ;;  %v1061_v34 = vmov 0   ;;  %vm540_vm1 = vcmask 523264  }
  0x29   : > { %214 = vst.msk [vmem:[#allocation2 + $0x8] sm:$0xff] %vm212_vm0, %v1059_v0  ;;  %216 = vst.msk [vmem:[#allocation2 + $0x18] sm:$0xff] %vm212_vm0, %v1059_v0  ;;  %v235_v6 = vld [vmem:[%s1152_s25 + $0x30] sm:$0xff]  ;;  %v236_v7 = vld [vmem:[%s1152_s25 + $0x38] sm:$0xff]  ;;  %v253_v8 = vadd.f32 %v230_v5, %v229_v3  ;;  %v302_v14 = vmax.f32 %v229_v3, %v230_v5  ;;  %971 = vset.pattern.permute.xlu0 %v1061_v34  ;;  %970 = vset.pattern.permute.xlu1 %v1061_v34  ;;  %vm1062_vm2 = vmmov 0   ;;  %vm618_vm3 = vcmask 31744  }
  0x2a   : > { %217 = vst.msk [vmem:[#allocation2 + $0x20] sm:$0xff] %vm212_vm0, %v1059_v0  ;;  %218 = vst.msk [vmem:[#allocation2 + $0x28] sm:$0xff] %vm212_vm0, %v1059_v0  ;;  %v231_v9 = vld [vmem:[%s1152_s25 + $0x10] sm:$0xff]  ;;  %v232_v10 = vld [vmem:[%s1152_s25 + $0x18] sm:$0xff]  ;;  %260 = vadd.xlane.f32.xlu1 %v259_v4  ;;  %v262_v11 = vadd.f32 %v236_v7, %v235_v6  ;;  %v311_v22 = vmax.f32 %v235_v6, %v236_v7  ;;  %887 = vmatprep.mubr.msk.f32.mxu0 %vm1062_vm2, %v1059_v0  ;;  %vm412_vm4 = vcmask 130112   ;;  %vm419_vm5 = vcmask 195712  }
  0x2b   : > { %219 = vst.msk [vmem:[#allocation2 + $0x30] sm:$0xff] %vm212_vm0, %v1059_v0  ;;  %220 = vst.msk [vmem:[#allocation2 + $0x38] sm:$0xff] %vm212_vm0, %v1059_v0  ;;  %254 = vadd.xlane.f32.xlu0 %v253_v8  ;;  %v256_v12 = vadd.f32 %v232_v10, %v231_v9  ;;  %v305_v13 = vmax.f32 %v231_v9, %v232_v10  ;;  %v237_v15 = vld [vmem:[%s1152_s25 + $0x40] sm:$0xff]  ;;  %v238_v16 = vld [vmem:[%s1152_s25 + $0x48] sm:$0xff]  ;;  %906 = vmatprep.mubr.msk.f32.mxu1 %vm1062_vm2, %v1059_v0  ;;  %vm426_vm6 = vcmask 261312   ;;  %vm433_vm7 = vcmask 326912  }
  0x2c   : > { %v265_v18 = vadd.f32 %v238_v16, %v237_v15  ;;  %v239_v19 = vld [vmem:[%s1152_s25 + $0x50] sm:$0xff]  ;;  %v240_v20 = vld [vmem:[%s1152_s25 + $0x58] sm:$0xff]  ;;  %222 = vst.msk [vmem:[#allocation3 + $0x8] sm:$0xff] %vm212_vm0, %v1060_v21  ;;  %221 = vst.msk [vmem:[#allocation3] sm:$0xff] %vm212_vm0, %v1060_v21  ;;  %v314_v26 = vmax.f32 %v237_v15, %v238_v16  ;;  %vm440_vm8 = vcmask 392512   ;;  %vm447_vm9 = vcmask 458112  }
  0x2d   : > { %223 = vst.msk [vmem:[#allocation3 + $0x10] sm:$0xff] %vm212_vm0, %v1060_v21  ;;  %224 = vst.msk [vmem:[#allocation3 + $0x18] sm:$0xff] %vm212_vm0, %v1060_v21  ;;  %v268_v23 = vadd.f32 %v240_v20, %v239_v19  ;;  %v241_v24 = vld [vmem:[%s1152_s25 + $0x60] sm:$0xff]  ;;  %v242_v25 = vld [vmem:[%s1152_s25 + $0x68] sm:$0xff]  ;;  %v317_v30 = vmax.f32 %v239_v19, %v240_v20  ;;  %vm454_vm10 = vcmask 523712   ;;  %vm529_vm11 = vcmask 1040384  }
  0x2e   : > { %263 = vadd.xlane.f32.xlu1 %v262_v11  ;;  %225 = vst.msk [vmem:[#allocation3 + $0x20] sm:$0xff] %vm212_vm0, %v1060_v21  ;;  %226 = vst.msk [vmem:[#allocation3 + $0x28] sm:$0xff] %vm212_vm0, %v1060_v21  ;;  %v271_v27 = vadd.f32 %v242_v25, %v241_v24  ;;  %v243_v28 = vld [vmem:[%s1152_s25 + $0x70] sm:$0xff]  ;;  %v244_v29 = vld [vmem:[%s1152_s25 + $0x78] sm:$0xff]  ;;  %v320_v33 = vmax.f32 %v241_v24, %v242_v25  ;;  %p203_p7 = scmp.lt.s32.totalorder %s1046_s15, 1 }
  0x2f   : > { %257 = vadd.xlane.f32.xlu0 %v256_v12  ;;  %227 = vst.msk [vmem:[#allocation3 + $0x30] sm:$0xff] %vm212_vm0, %v1060_v21  ;;  %228 = vst.msk [vmem:[#allocation3 + $0x38] sm:$0xff] %vm212_vm0, %v1060_v21  ;;  %v274_v31 = vadd.f32 %v244_v29, %v243_v28  ;;  %v323_v32 = vmax.f32 %v243_v28, %v244_v29  ;;  %v247_v35 = vld [vmem:[#allocation2 + $0x10] sm:$0xff]  ;;  %v245_v36 = vld [vmem:[#allocation2] sm:$0xff] }
  0x30   : > { %v248_v41 = vld [vmem:[#allocation2 + $0x18] sm:$0xff]  ;;  %v246_v42 = vld [vmem:[#allocation2 + $0x8] sm:$0xff]  ;;  %s1324_s15 = smov (!%p203_p7, %s1046_s15), 1 }
  0x31   : > { %v249_v54 = vld [vmem:[#allocation2 + $0x20] sm:$0xff]  ;;  %v250_v60 = vld [vmem:[#allocation2 + $0x28] sm:$0xff]  ;;  %s873_s22 = sshll.u32 %s1324_s15, 6 }
  0x32   : > { %306 = vmax.xlane.f32.xlu1 %v305_v13  ;;  %v251_v4 = vld [vmem:[#allocation2 + $0x30] sm:$0xff]  ;;  %v252_v11 = vld [vmem:[#allocation2 + $0x38] sm:$0xff]  ;;  %s207_s26 = scalar_lea.vmem %s1312_s3, %s873_s22 }
  0x33   : > { %303 = vmax.xlane.f32.xlu0 %v302_v14  ;;  %v295_v47 = vld [vmem:[#allocation3 + $0x8] sm:$0xff]  ;;  %v294_v48 = vld [vmem:[#allocation3] sm:$0xff] }
  0x34   : > { %v296_v53 = vld [vmem:[#allocation3 + $0x10] sm:$0xff]  ;;  %v297_v58 = vld [vmem:[#allocation3 + $0x18] sm:$0xff] }
  0x35   : > { %v298_v1 = vld [vmem:[#allocation3 + $0x20] sm:$0xff]  ;;  %v299_v9 = vld [vmem:[#allocation3 + $0x28] sm:$0xff] }
  0x36   : > { %309 = vmax.xlane.f32.xlu1 %v308_v17  ;;  %v301_v17 = vld [vmem:[#allocation3 + $0x38] sm:$0xff] }
  0x37   : > { %266 = vadd.xlane.f32.xlu0 %v265_v18  ;;  %v300_v18 = vld [vmem:[#allocation3 + $0x30] sm:$0xff] }
  0x3a   : > { %312 = vmax.xlane.f32.xlu1 %v311_v22 }
  0x3b   : > { %269 = vadd.xlane.f32.xlu0 %v268_v23 }
  0x3e   : > { %315 = vmax.xlane.f32.xlu1 %v314_v26 }
  0x3f   : > { %272 = vadd.xlane.f32.xlu0 %v271_v27 }
  0x42   : > { %318 = vmax.xlane.f32.xlu1 %v317_v30 }
  0x43   : > { %275 = vadd.xlane.f32.xlu0 %v274_v31 }
  0x46   : > { %324 = vmax.xlane.f32.xlu1 %v323_v32 }
  0x47   : > { %321 = vmax.xlane.f32.xlu0 %v320_v33 }
  0xb3   : > { %v261_v37 = vpop.xlane.xlu1 %260 }
  0xb4   : > { %v279_v38 = vadd.f32 %v261_v37, %v247_v35  ;;  %v255_v39 = vpop.xlane.xlu0 %254 }
  0xb5   : > { %v277_v40 = vadd.f32 %v255_v39, %v245_v36 }
  0xb6   : > { %288 = vst.msk [vmem:[#allocation2 + $0x10] sm:$0xff] %vm212_vm0, %v279_v38 }
  0xb7   : > { %286 = vst.msk [vmem:[#allocation2] sm:$0xff] %vm212_vm0, %v277_v40  ;;  %v264_v43 = vpop.xlane.xlu1 %263 }
  0xb8   : > { %v280_v44 = vadd.f32 %v264_v43, %v248_v41  ;;  %v258_v45 = vpop.xlane.xlu0 %257  ;;  %v531_v43 = vld [vmem:[%s1310_s1] sm:$0xf] }
  0xb9   : > { %v278_v46 = vadd.f32 %v258_v45, %v246_v42  ;;  %886 = vmatpush3.xpose.msk.msra.mxu0 %vm540_vm1, %v531_v43  ;;  %v539_v45 = vld [vmem:[%s1311_s2 + $0x38] sm:$0xff] }
  0xba   : > { %289 = vst.msk [vmem:[#allocation2 + $0x18] sm:$0xff] %vm212_vm0, %v280_v44  ;;  %891 = vmatpush3.xpose.msk.msra.mxu1 %vm618_vm3, %v539_v45 }
  0xbb   : > { %287 = vst.msk [vmem:[#allocation2 + $0x8] sm:$0xff] %vm212_vm0, %v278_v46  ;;  %v307_v49 = vpop.xlane.xlu1 %306  ;;  %892 = vmatprep.subr.mxu1 %v1059_v0  ;;  %v538_v46 = vld [vmem:[%s1311_s2 + $0x30] sm:$0xff] }
  0xbc   : > { %v327_v50 = vmax.f32 %v295_v47, %v307_v49  ;;  %v304_v51 = vpop.xlane.xlu0 %303  ;;  %v537_v47 = vld [vmem:[%s1311_s2 + $0x28] sm:$0xff]  ;;  %v535_v49 = vld [vmem:[%s1311_s2 + $0x18] sm:$0xff] }
  0xbd   : > { %v326_v52 = vmax.f32 %v294_v48, %v304_v51  ;;  %v347_v29 = vld [vmem:[#allocation2 + $0x10] sm:$0xff]  ;;  %v536_v48 = vld [vmem:[%s1311_s2 + $0x20] sm:$0xff]  ;;  %v533_v51 = vld [vmem:[%s1311_s2 + $0x8] sm:$0xff] }
  0xbe   : > { %335 = vst.msk [vmem:[#allocation3 + $0x8] sm:$0xff] %vm212_vm0, %v327_v50  ;;  %v345_v28 = vld [vmem:[#allocation2] sm:$0xff]  ;;  %v355_v31 = vmul.f32 0.00390625, %v347_v29  ;;  %893 = vmatpush3.xpose.msk.msra.mxu1 %vm618_vm3, %v538_v46  ;;  %v534_v50 = vld [vmem:[%s1311_s2 + $0x10] sm:$0xff] }
  0xbf   : > { %334 = vst.msk [vmem:[#allocation3] sm:$0xff] %vm212_vm0, %v326_v52  ;;  %v310_v55 = vpop.xlane.xlu1 %309  ;;  %v353_v30 = vmul.f32 0.00390625, %v345_v28  ;;  %894 = vmatprep.subr.mxu1 %v1059_v0 }
  0xc0   : > { %v328_v56 = vmax.f32 %v296_v53, %v310_v55  ;;  %v267_v57 = vpop.xlane.xlu0 %266 }
  0xc1   : > { %v281_v59 = vadd.f32 %v267_v57, %v249_v54  ;;  %v348_v32 = vld [vmem:[#allocation2 + $0x18] sm:$0xff] }
  0xc2   : > { %336 = vst.msk [vmem:[#allocation3 + $0x10] sm:$0xff] %vm212_vm0, %v328_v56  ;;  %v346_v25 = vld [vmem:[#allocation2 + $0x8] sm:$0xff]  ;;  %v356_v34 = vmul.f32 0.00390625, %v348_v32  ;;  %895 = vmatpush3.xpose.msk.msra.mxu1 %vm618_vm3, %v537_v47 }
  0xc3   : > { %v313_v61 = vpop.xlane.xlu1 %312  ;;  %290 = vst.msk [vmem:[#allocation2 + $0x20] sm:$0xff] %vm212_vm0, %v281_v59  ;;  %v354_v27 = vmul.f32 0.00390625, %v346_v25  ;;  %896 = vmatprep.subr.mxu1 %v1059_v0 }
  0xc4   : > { %v329_v62 = vmax.f32 %v297_v58, %v313_v61  ;;  %v270_v63 = vpop.xlane.xlu0 %269  ;;  %v401_v58 = vlaneseq }
  0xc5   : > { %v282_v2 = vadd.f32 %v270_v63, %v250_v60  ;;  %v362_v7 = vld [vmem:[#allocation3 + $0x8] sm:$0xff] }
  0xc6   : > { %337 = vst.msk [vmem:[#allocation3 + $0x18] sm:$0xff] %vm212_vm0, %v329_v62  ;;  %v361_v3 = vld [vmem:[#allocation3] sm:$0xff]  ;;  %897 = vmatpush3.xpose.msk.msra.mxu1 %vm618_vm3, %v536_v48  ;;  %v402_v61 = vand.u32 127, %v401_v58 }
  0xc7   : > { %466 = vperm.xlu1 %970, %v361_v3   ;;  %v316_v5 = vpop.xlane.xlu1 %315  ;;  %291 = vst.msk [vmem:[#allocation2 + $0x28] sm:$0xff] %vm212_vm0, %v282_v2  ;;  %898 = vmatprep.subr.mxu1 %v1059_v0  ;;  %v1257_v3 = vshrl.u32 %v401_v58, 7 }
  0xc8   : > { %v330_v6 = vmax.f32 %v298_v1, %v316_v5  ;;  %v273_v8 = vpop.xlane.xlu0 %272  ;;  %v407_v62 = vadd.s32 4294967288, %v402_v61  ;;  %v414_v63 = vadd.s32 4294967280, %v402_v61 }
  0xc9   : > { %v283_v10 = vadd.f32 %v273_v8, %v251_v4  ;;  %v363_v14 = vld [vmem:[#allocation3 + $0x10] sm:$0xff]  ;;  %v421_v4 = vadd.s32 4294967272, %v402_v61  ;;  %v405_v8 = vsub.s32 %v402_v61, %v1257_v3 }
  0xca   : > { %338 = vst.msk [vmem:[#allocation3 + $0x20] sm:$0xff] %vm212_vm0, %v330_v6  ;;  %v349_v35 = vld [vmem:[#allocation2 + $0x20] sm:$0xff]  ;;  %899 = vmatpush3.xpose.msk.msra.mxu1 %vm618_vm3, %v535_v49  ;;  %v410_v5 = vsub.s32 %v407_v62, %v1257_v3  ;;  %v428_v6 = vadd.s32 4294967264, %v402_v61 }
  0xcb   : > { %469 = vperm.xlu1 %970, %v362_v7   ;;  %v319_v12 = vpop.xlane.xlu1 %318  ;;  %292 = vst.msk [vmem:[#allocation2 + $0x30] sm:$0xff] %vm212_vm0, %v283_v10  ;;  %v357_v37 = vmul.f32 0.00390625, %v349_v35  ;;  %900 = vmatprep.subr.mxu1 %v1059_v0  ;;  %v435_v10 = vadd.s32 4294967256, %v402_v61 }
  0xcc   : > { %v331_v13 = vmax.f32 %v299_v9, %v319_v12  ;;  %v276_v15 = vpop.xlane.xlu0 %275  ;;  %v424_v9 = vsub.s32 %v421_v4, %v1257_v3 }
  0xcd   : > { %v284_v16 = vadd.f32 %v276_v15, %v252_v11  ;;  %v364_v20 = vld [vmem:[#allocation3 + $0x18] sm:$0xff]  ;;  %v442_v11 = vadd.s32 4294967248, %v402_v61  ;;  %v449_v15 = vadd.s32 4294967240, %v402_v61 }
  0xce   : > { %339 = vst.msk [vmem:[#allocation3 + $0x28] sm:$0xff] %vm212_vm0, %v331_v13  ;;  %v350_v38 = vld [vmem:[#allocation2 + $0x28] sm:$0xff]  ;;  %901 = vmatpush3.xpose.msk.msra.mxu1 %vm618_vm3, %v534_v50 }
  0xcf   : > { %472 = vperm.xlu1 %970, %v363_v14   ;;  %293 = vst.msk [vmem:[#allocation2 + $0x38] sm:$0xff] %vm212_vm0, %v284_v16  ;;  %v325_v19 = vpop.xlane.xlu1 %324  ;;  %v358_v39 = vmul.f32 0.00390625, %v350_v38  ;;  %902 = vmatprep.subr.mxu1 %v1059_v0  ;;  %v452_v28 = vsub.s32 %v449_v15, %v1257_v3 }
  0xd0   : > { %v322_v21 = vpop.xlane.xlu0 %321  ;;  %v333_v22 = vmax.f32 %v301_v17, %v325_v19  ;;  %v431_v17 = vsub.s32 %v428_v6, %v1257_v3 }
  0xd1   : > { %v365_v23 = vld [vmem:[#allocation3 + $0x20] sm:$0xff]  ;;  %v332_v24 = vmax.f32 %v300_v18, %v322_v21  ;;  %v438_v21 = vsub.s32 %v435_v10, %v1257_v3 }
  0xd2   : > { %478 = vperm.xlu0 %971, %v365_v23   ;;  %341 = vst.msk [vmem:[#allocation3 + $0x38] sm:$0xff] %vm212_vm0, %v333_v22  ;;  %v351_v40 = vld [vmem:[#allocation2 + $0x30] sm:$0xff]  ;;  %903 = vmatpush3.xpose.msk.msra.mxu1 %vm618_vm3, %v533_v51 }
  0xd3   : > { %475 = vperm.xlu1 %970, %v364_v20   ;;  %340 = vst.msk [vmem:[#allocation3 + $0x30] sm:$0xff] %vm212_vm0, %v332_v24  ;;  %v359_v41 = vmul.f32 0.00390625, %v351_v40  ;;  %904 = vmatprep.subr.mxu1 %v1059_v0  ;;  %v417_v0 = vsub.s32 %v414_v63, %v1257_v3  ;;  %v445_v24 = vsub.s32 %v442_v11, %v1257_v3 }
  0xd5   : > { %v366_v26 = vld [vmem:[#allocation3 + $0x28] sm:$0xff] }
  0xd6   : > { %481 = vperm.xlu0 %971, %v366_v26   ;;  %v352_v42 = vld [vmem:[#allocation2 + $0x38] sm:$0xff] }
  0xd7   : > { %381 = vperm.xlu1 %970, %v354_v27   ;;  %v360_v44 = vmul.f32 0.00390625, %v352_v42 }
  0xd9   : > { %v368_v36 = vld [vmem:[#allocation3 + $0x38] sm:$0xff] }
  0xda   : > { %378 = vperm.xlu0 %971, %v353_v30   ;;  %v367_v33 = vld [vmem:[#allocation3 + $0x30] sm:$0xff] }
  0xdb   : > { %384 = vperm.xlu1 %970, %v355_v31  }
  0xde   : > { %484 = vperm.xlu0 %971, %v367_v33  }
  0xdf   : > { %387 = vperm.xlu1 %970, %v356_v34  }
  0xe2   : > { %487 = vperm.xlu0 %971, %v368_v36  }
  0xe3   : > { %390 = vperm.xlu1 %970, %v357_v37  }
  0xe7   : > { %393 = vperm.xlu1 %970, %v358_v39  }
  0xeb   : > { %396 = vperm.xlu1 %970, %v359_v41  }
  0xef   : > { %399 = vperm.xlu1 %970, %v360_v44  }
 0x142   : > { %v467_v52 = vpop.permute.xlu1 %466 }
 0x143   : > { %v492_v19 = vrot.slane %v467_v52, %v405_v8 }
 0x146   : > { %v470_v53 = vpop.permute.xlu1 %469 }
 0x147   : > { %v496_v13 = vrot.slane %v470_v53, %v410_v5  ;;  %v532_v53 = vld [vmem:[%s1311_s2] sm:$0xff] }
 0x148   : > { %905 = vmatpush3.xpose.msk.msra.mxu1 %vm618_vm3, %v532_v53 }
 0x149   : > { %v497_v25 = vsel %vm412_vm4, %v496_v13, %v492_v19 }
 0x14a   : > { %v473_v54 = vpop.permute.xlu1 %472 }
 0x14b   : > { %v501_v16 = vrot.slane %v473_v54, %v417_v0 }
 0x14d   : > { %v479_v55 = vpop.permute.xlu0 %478  ;;  %v502_v29 = vsel %vm419_vm5, %v501_v16, %v497_v25 }
 0x14e   : > { %v476_v56 = vpop.permute.xlu1 %475  ;;  %v511_v30 = vrot.slane %v479_v55, %v431_v17 }
 0x14f   : > { %v506_v20 = vrot.slane %v476_v56, %v424_v9 }
 0x151   : > { %v482_v59 = vpop.permute.xlu0 %481  ;;  %v507_v34 = vsel %vm426_vm6, %v506_v20, %v502_v29 }
 0x152   : > { %v382_v57 = vpop.permute.xlu1 %381  ;;  %v516_v35 = vrot.slane %v482_v59, %v438_v21  ;;  %v512_v42 = vsel %vm433_vm7, %v511_v30, %v507_v34 }
 0x153   : > { %v411_v22 = vrot.slane %v382_v57, %v410_v5 }
 0x154   : > { %v517_v45 = vsel %vm440_vm8, %v516_v35, %v512_v42 }
 0x155   : > { %v379_v1 = vpop.permute.xlu0 %378 }
 0x156   : > { %v385_v60 = vpop.permute.xlu1 %384  ;;  %v406_v14 = vrot.slane %v379_v1, %v405_v8  ;;  %v728_v1 = vsub.s32 0, %v1257_v3 }
 0x157   : > { %v418_v23 = vrot.slane %v385_v60, %v417_v0 }
 0x158   : > { %v413_v26 = vsel %vm412_vm4, %v411_v22, %v406_v14 }
 0x159   : > { %v485_v12 = vpop.permute.xlu0 %484  ;;  %v420_v37 = vsel %vm419_vm5, %v418_v23, %v413_v26 }
 0x15a   : > { %v388_v2 = vpop.permute.xlu1 %387  ;;  %v521_v38 = vrot.slane %v485_v12, %v445_v24 }
 0x15b   : > { %v425_v27 = vrot.slane %v388_v2, %v424_v9 }
 0x15c   : > { %v522_v48 = vsel %vm447_vm9, %v521_v38, %v517_v45 }
 0x15d   : > { %v488_v32 = vpop.permute.xlu0 %487  ;;  %v427_v40 = vsel %vm426_vm6, %v425_v27, %v420_v37 }
 0x15e   : > { %v391_v7 = vpop.permute.xlu1 %390  ;;  %v526_v41 = vrot.slane %v488_v32, %v452_v28 }
 0x15f   : > { %v432_v31 = vrot.slane %v391_v7, %v431_v17 }
 0x160   : > { %v527_v50 = vsel %vm454_vm10, %v526_v41, %v522_v48 }
 0x161   : > { %v434_v43 = vsel %vm433_vm7, %v432_v31, %v427_v40 }
 0x162   : > { %v394_v18 = vpop.permute.xlu1 %393 }
 0x163   : > { %v439_v36 = vrot.slane %v394_v18, %v438_v21 }
 0x165   : > { %v441_v46 = vsel %vm440_vm8, %v439_v36, %v434_v43 }
 0x166   : > { %v397_v33 = vpop.permute.xlu1 %396 }
 0x167   : > { %v446_v39 = vrot.slane %v397_v33, %v445_v24 }
 0x169   : > { %v448_v49 = vsel %vm447_vm9, %v446_v39, %v441_v46 }
 0x16a   : > { %v400_v44 = vpop.permute.xlu1 %399 }
 0x16b   : > { %v453_v47 = vrot.slane %v400_v44, %v452_v28 }
 0x16d   : > { %v455_v51 = vsel %vm454_vm10, %v453_v47, %v448_v49 }
 0x16e   : > { %v530_v52 = vsel %vm529_vm11, %v455_v51, %v527_v50 }
 0x16f   : > { %888 = vmatmul.mubr.msk.f32.vlgmr.msra.gmra.mxu0 %vm540_vm1, %v530_v52 }
 0x22f   : > { %v613_v54 = vpop.f32.mrf.mxu0 }
 0x230   : > { %v617_v55 = vmax.f32 %v613_v54, 0.0 }
 0x231   : > { %v889_v56 = vpop.f32.mrf.mxu0 }
 0x232   : > { %907 = vmatmul.mubr.msk.f32.vlgmr.msra.gmra.mxu1 %vm618_vm3, %v617_v55 }
 0x2f2   : > { %v712_v57 = vpop.f32.mrf.mxu1 }
 0x2f3   : > { %v717_v58 = vrot.slane %v712_v57, 1 }
 0x2f4   : > { %v908_v59 = vpop.f32.mrf.mxu1 }
 0x2f5   : > { %v719_v60 = vadd.f32 %v717_v58, %v712_v57 }
 0x2f7   : > { %v869_v61 = vmul.f32 -1.442695, %v719_v60 }
 0x2f9   : > { %972 = vpow2.f32 %v869_v61 }
 0x306   : > { %v973_v62 = vpop.eup %972 }
 0x307   : > { %v723_v63 = vadd.f32 1.0, %v973_v62 }
 0x309   : > { %974 = vrcp.f32 %v723_v63 }
 0x316   : > { %v975_v2 = vpop.eup %974 }
 0x317   : > { %v729_v4 = vrot.slane %v975_v2, %v728_v1 }
 0x319   : > { %735 = vbcast.lane.b32.xlu0 %v729_v4, 264  ;;  %731 = vbcast.lane.b32.xlu1 %v729_v4, 256 }
 0x31d   : > { %743 = vbcast.lane.b32.xlu0 %v729_v4, 280  ;;  %739 = vbcast.lane.b32.xlu1 %v729_v4, 272 }
 0x321   : > { %751 = vbcast.lane.b32.xlu0 %v729_v4, 296  ;;  %747 = vbcast.lane.b32.xlu1 %v729_v4, 288 }
 0x325   : > { %759 = vbcast.lane.b32.xlu0 %v729_v4, 312  ;;  %755 = vbcast.lane.b32.xlu1 %v729_v4, 304 }
 0x38b   : > { %v736_v5 = vpop.permute.xlu0 %735  ;;  %v732_v0 = vpop.permute.xlu1 %731 }
 0x38c   : > { %762 = vst.msk [vmem:[%s207_s26 + $0x8] sm:$0xff] %vm212_vm0, %v736_v5  ;;  %761 = vst.msk [vmem:[%s207_s26] sm:$0xff] %vm212_vm0, %v732_v0 }
 0x38f   : > { %v744_v3 = vpop.permute.xlu0 %743  ;;  %v740_v6 = vpop.permute.xlu1 %739 }
 0x390   : > { %764 = vst.msk [vmem:[%s207_s26 + $0x18] sm:$0xff] %vm212_vm0, %v744_v3  ;;  %763 = vst.msk [vmem:[%s207_s26 + $0x10] sm:$0xff] %vm212_vm0, %v740_v6 }
 0x393   : > { %v752_v7 = vpop.permute.xlu0 %751  ;;  %v748_v8 = vpop.permute.xlu1 %747 }
 0x394   : > { %766 = vst.msk [vmem:[%s207_s26 + $0x28] sm:$0xff] %vm212_vm0, %v752_v7  ;;  %765 = vst.msk [vmem:[%s207_s26 + $0x20] sm:$0xff] %vm212_vm0, %v748_v8 }
 0x397   : > { %v760_v9 = vpop.permute.xlu0 %759  ;;  %v756_v10 = vpop.permute.xlu1 %755 }
 0x398   : > { %768 = vst.msk [vmem:[%s207_s26 + $0x38] sm:$0xff] %vm212_vm0, %v760_v9  ;;  %767 = vst.msk [vmem:[%s207_s26 + $0x30] sm:$0xff] %vm212_vm0, %v756_v10 }
 0x399 PF: > { %s16_s17 = sadd.s32 1, %s1054_s17   ;;  %s1316_s12 = smov %s1038_s13 }
 0x39a   : > { %p13_p8 = scmp.ge.s32.totalorder %s16_s17, 4   ;;  %s1317_s13 = smov %s1042_s14 }
 0x39b   : > { %s1318_s14 = smov %s1132_s24  ;;  %s1319_s15 = smov %s1050_s16 }
 0x39c   : > { %s1320_s16 = smov %s1322_s19  ;;  %15 = sbr.rel (!%p13_p8) target bundleno = 4 (0x4), region = 80 }
 0x3a1   :  { %790 = vsyncpa [#allocation5], 1 }
 0x3a2   :  { %792 = vsyncpa [#allocation5 + $0x1], 1 }

</bundles_post_ra>
